<compile_context>
chip_gen: v7x
topology: tpu7x:2x2x1
jax: 0.10.0
libtpu: 0.0.40
codegen_flags: <defaults>
</compile_context>

<pallas_src>
import jax
import jax.numpy as jnp
from jax.experimental import pallas as pl
from jax.experimental.pallas import tpu as pltpu

INPUT_DIM = 768
H1 = 512
H2 = 256
NUM_CLASSES = 1
BN_EPS = 1e-5

MAX_TILE_B = 1024
VMEM_LIMIT_BYTES = 32 * 1024 * 1024


# ---------------------------------------------------------------------------
# Kernel
# ---------------------------------------------------------------------------
def _mlp_kernel(x_ref, w1_ref, t1_ref, w2_ref, t2_ref, w3_ref, b3_ref, o_ref):
    # x tile arrives in its HBM dtype (f32 or bf16); cast to bf16 in-kernel so
    # no separate host-side cast pass over x is needed.
    x = x_ref[...].astype(jnp.bfloat16)

    # ---- Layer 1: Linear(768->512) with BN folded in, ReLU ------------------
    h1 = jnp.dot(x, w1_ref[...], preferred_element_type=jnp.float32)
    h1 = jnp.maximum(h1 + t1_ref[...], 0.0)                   # (TILE_B, 512) f32

    # ---- Layer 2: Linear(512->256) with BN folded in, ReLU ------------------
    h2 = jnp.dot(h1.astype(jnp.bfloat16), w2_ref[...],
                 preferred_element_type=jnp.float32)
    h2 = jnp.maximum(h2 + t2_ref[...], 0.0)                   # (TILE_B, 256) f32

    # ---- Layer 3: Linear(256->1) as an N=1 MXU matmul ------------------------
    o = jnp.dot(h2.astype(jnp.bfloat16), w3_ref[...],
                preferred_element_type=jnp.float32)            # (TILE_B, 1)
    o_ref[...] = (o + b3_ref[...]).astype(o_ref.dtype)


# ---------------------------------------------------------------------------
# Host-side parameter preparation: fold BatchNorm (eval mode) into the Linear
# weights/bias, quantize the weight matrices to bf16 for the MXU.
# ---------------------------------------------------------------------------
def prepare_inference_params(params):
    def fold(w, b, gamma, beta, mean, var):
        scale = gamma / jnp.sqrt(var + BN_EPS)        # (out,)
        shift = beta - mean * scale                   # (out,)
        w_f = w * scale[None, :]                      # (in, out)
        b_f = b * scale + shift                       # (out,)
        return w_f, b_f

    w1f, t1 = fold(params["w1"], params["b1"], params["bn1_gamma"],
                   params["bn1_beta"], params["bn1_mean"], params["bn1_var"])
    w2f, t2 = fold(params["w2"], params["b2"], params["bn2_gamma"],
                   params["bn2_beta"], params["bn2_mean"], params["bn2_var"])

    return {
        "w1": w1f.astype(jnp.bfloat16),                       # (768, 512)
        "t1": t1[None, :].astype(jnp.float32),                # (1, 512)
        "w2": w2f.astype(jnp.bfloat16),                       # (512, 256)
        "t2": t2[None, :].astype(jnp.float32),                # (1, 256)
        "w3": params["w3"].astype(jnp.bfloat16),              # (256, 1)
        "b3": params["b3"][None, :].astype(jnp.float32),      # (1, 1)
    }


def _choose_tile_b(B):
    # Largest tile that amortizes the ~0.35 us/step pipeline overhead while
    # staying inside the 32 MiB scoped-VMEM budget we request explicitly.
    if B >= MAX_TILE_B:
        return MAX_TILE_B
    if B <= 8:
        return B                       # full-extent block (any size allowed)
    # x block is f32 (cast happens in-kernel), so 8 is the sublane multiple.
    return ((B + 7) // 8) * 8


def clinical_bert_classifier_forward(x, inf_params, tile_b=None):
    """x: (B, 768) float32 (or bfloat16). Returns (B, 1) float32 logits."""
    B = x.shape[0]
    assert x.shape[1] == INPUT_DIM, x.shape
    if tile_b is None:
        tile_b = _choose_tile_b(B)

    # Ragged last tile handled by cdiv grid + Pallas OOB masking (rows are
    # independent, so garbage in padded input rows never touches valid rows,
    # and OOB output rows are never written) -- no host-side pad copy.
    grid = (pl.cdiv(B, tile_b),)

    def resident(shape):
        # Same block every grid step -> stays resident in VMEM (DMA'd once).
        return pl.BlockSpec(shape, lambda i: (0, 0))

    weight_bytes = ((INPUT_DIM * H1 + H1 * H2 + H2 * NUM_CLASSES) * 2
                    + (H1 + H2 + NUM_CLASSES) * 4)
    cost = pl.CostEstimate(
        flops=2 * B * (INPUT_DIM * H1 + H1 * H2 + H2 * NUM_CLASSES),
        transcendentals=0,
        bytes_accessed=B * INPUT_DIM * x.dtype.itemsize
                       + B * NUM_CLASSES * 4 + weight_bytes,
    )

    return pl.pallas_call(
        _mlp_kernel,
        out_shape=jax.ShapeDtypeStruct((B, NUM_CLASSES), jnp.float32),
        grid=grid,
        in_specs=[
            pl.BlockSpec((tile_b, INPUT_DIM), lambda i: (i, 0)),   # x tile
            resident((INPUT_DIM, H1)),                             # w1 (bf16)
            resident((1, H1)),                                     # folded bias 1
            resident((H1, H2)),                                    # w2 (bf16)
            resident((1, H2)),                                     # folded bias 2
            resident((H2, NUM_CLASSES)),                           # w3 (bf16)
            resident((1, NUM_CLASSES)),                            # b3
        ],
        out_specs=pl.BlockSpec((tile_b, NUM_CLASSES), lambda i: (i, 0)),
        compiler_params=pltpu.CompilerParams(
            dimension_semantics=("parallel",),   # use pltpu.CORE_PARALLEL on v7x
            vmem_limit_bytes=VMEM_LIMIT_BYTES,   # covers TILE_B=1024 on v5e too
        ),
        cost_estimate=cost,
    )(x, inf_params["w1"], inf_params["t1"], inf_params["w2"],
      inf_params["t2"], inf_params["w3"], inf_params["b3"])


# ---------------------------------------------------------------------------
# Parameter init (PyTorch-equivalent structure) and pure-JAX references.
# ---------------------------------------------------------------------------
def init_params(key):
    ks = jax.random.split(key, 6)
    return {
        # Linear weights stored as (in, out) == PyTorch weight.T
        "w1": jax.random.normal(ks[0], (INPUT_DIM, H1), jnp.float32) * 0.02,
        "b1": jax.random.normal(ks[1], (H1,), jnp.float32) * 0.02,
        "w2": jax.random.normal(ks[2], (H1, H2), jnp.float32) * 0.02,
        "b2": jax.random.normal(ks[3], (H2,), jnp.float32) * 0.02,
        "w3": jax.random.normal(ks[4], (H2, NUM_CLASSES), jnp.float32) * 0.02,
        "b3": jax.random.normal(ks[5], (NUM_CLASSES,), jnp.float32) * 0.02,
        # BatchNorm1d params (PyTorch init: gamma=1, beta=0, mean=0, var=1)
        "bn1_gamma": jnp.ones((H1,), jnp.float32),
        "bn1_beta": jnp.zeros((H1,), jnp.float32),
        "bn1_mean": jnp.zeros((H1,), jnp.float32),
        "bn1_var": jnp.ones((H1,), jnp.float32),
        "bn2_gamma": jnp.ones((H2,), jnp.float32),
        "bn2_beta": jnp.zeros((H2,), jnp.float32),
        "bn2_mean": jnp.zeros((H2,), jnp.float32),
        "bn2_var": jnp.ones((H2,), jnp.float32),
    }


def _reference(x, p):
    """Mirrors the kernel's bf16-operand / f32-accumulate arithmetic."""
    bf = lambda a: a.astype(jnp.bfloat16)
    h1 = jnp.maximum(jnp.dot(bf(x), p["w1"],
                             preferred_element_type=jnp.float32) + p["t1"], 0.0)
    h2 = jnp.maximum(jnp.dot(bf(h1), p["w2"],
                             preferred_element_type=jnp.float32) + p["t2"], 0.0)
    return jnp.dot(bf(h2), p["w3"],
                   preferred_element_type=jnp.float32) + p["b3"]


def _reference_f32(x, p):
    """Full-precision eval-mode reference of the original module."""
    def bn(h, g, b, m, v):
        return (h - m) / jnp.sqrt(v + BN_EPS) * g + b
    h = jnp.maximum(bn(x @ p["w1"] + p["b1"], p["bn1_gamma"], p["bn1_beta"],
                       p["bn1_mean"], p["bn1_var"]), 0.0)
    h = jnp.maximum(bn(h @ p["w2"] + p["b2"], p["bn2_gamma"], p["bn2_beta"],
                       p["bn2_mean"], p["bn2_var"]), 0.0)
    return h @ p["w3"] + p["b3"]


if __name__ == "__main__":
    key = jax.random.PRNGKey(0)
    kx, kp = jax.random.split(key)

    params = init_params(kp)
    inf_params = prepare_inference_params(params)

    # Case 1: small batch, single exact grid step.
    B = 8
    x = jax.random.normal(kx, (B, INPUT_DIM), jnp.float32)
    out = jax.block_until_ready(clinical_bert_classifier_forward(x, inf_params))
    ref = _reference(x, inf_params)
    ref_f32 = _reference_f32(x, params)
    assert out.shape == (B, NUM_CLASSES), out.shape
    assert jnp.allclose(out, ref, atol=2e-3, rtol=2e-3), (
        float(jnp.max(jnp.abs(out - ref))))
    assert jnp.allclose(out, ref_f32, atol=5e-2, rtol=5e-2), (
        float(jnp.max(jnp.abs(out - ref_f32))))

    # Case 2: non-multiple batch with an explicit small tile -> multi-step grid
    # with a ragged (masked) last tile, no host-side padding.
    B2 = 20
    x2 = jax.random.normal(jax.random.PRNGKey(1), (B2, INPUT_DIM), jnp.float32)
    out2 = jax.block_until_ready(
        clinical_bert_classifier_forward(x2, inf_params, tile_b=8))
    ref2 = _reference(x2, inf_params)
    assert out2.shape == (B2, NUM_CLASSES), out2.shape
    assert jnp.allclose(out2, ref2, atol=2e-3, rtol=2e-3), (
        float(jnp.max(jnp.abs(out2 - ref2))))

    # Case 3: default tile selection on a batch that is a sublane multiple.
    B3 = 48
    x3 = jax.random.normal(jax.random.PRNGKey(2), (B3, INPUT_DIM), jnp.float32)
    out3 = jax.block_until_ready(clinical_bert_classifier_forward(x3, inf_params))
    ref3 = _reference(x3, inf_params)
    assert out3.shape == (B3, NUM_CLASSES), out3.shape
    assert jnp.allclose(out3, ref3, atol=2e-3, rtol=2e-3), (
        float(jnp.max(jnp.abs(out3 - ref3))))

    print("KERNEL_OK")
</pallas_src>

<mosaic_0001>
module attributes {stable_mosaic.version = 11 : i64} {
  func.func @_mlp_kernel(%arg0: i32, %arg1: memref<8x768xf32, #tpu.memory_space<vmem>>, %arg2: memref<768x512xbf16, #tpu.memory_space<vmem>>, %arg3: memref<1x512xf32, #tpu.memory_space<vmem>>, %arg4: memref<512x256xbf16, #tpu.memory_space<vmem>>, %arg5: memref<1x256xf32, #tpu.memory_space<vmem>>, %arg6: memref<256x1xbf16, #tpu.memory_space<vmem>>, %arg7: memref<1x1xf32, #tpu.memory_space<vmem>>, %arg8: memref<8x1xf32, #tpu.memory_space<vmem>>) attributes {dimension_semantics = [#tpu.dimension_semantics<parallel>], iteration_bounds = array<i64: 1>, scalar_prefetch = 0 : i64, scratch_operands = 0 : i64, tpu.core_type = #tpu.core_type<tc>, window_params = [{transform_indices = @transform_0, window_bounds = array<i64: 8, 768>}, {pipeline_mode = #tpu.pipeline_mode<synchronous>, transform_indices = @transform_1, window_bounds = array<i64: 768, 512>}, {pipeline_mode = #tpu.pipeline_mode<synchronous>, transform_indices = @transform_2, window_bounds = array<i64: 1, 512>}, {pipeline_mode = #tpu.pipeline_mode<synchronous>, transform_indices = @transform_3, window_bounds = array<i64: 512, 256>}, {pipeline_mode = #tpu.pipeline_mode<synchronous>, transform_indices = @transform_4, window_bounds = array<i64: 1, 256>}, {pipeline_mode = #tpu.pipeline_mode<synchronous>, transform_indices = @transform_5, window_bounds = array<i64: 256, 1>}, {pipeline_mode = #tpu.pipeline_mode<synchronous>, transform_indices = @transform_6, window_bounds = array<i64: 1, 1>}, {transform_indices = @transform_7, window_bounds = array<i64: 8, 1>}]} {
    %c0 = arith.constant 0 : index
    %c0_0 = arith.constant 0 : index
    %0 = vector.load %arg1[%c0, %c0_0] : memref<8x768xf32, #tpu.memory_space<vmem>>, vector<8x768xf32>
    %1 = arith.truncf %0 : vector<8x768xf32> to vector<8x768xbf16>
    %c0_1 = arith.constant 0 : index
    %c0_2 = arith.constant 0 : index
    %2 = vector.load %arg2[%c0_1, %c0_2] : memref<768x512xbf16, #tpu.memory_space<vmem>>, vector<768x512xbf16>
    %cst = arith.constant dense<0.000000e+00> : vector<8x512xf32>
    %3 = tpu.matmul %1, %2, %cst {dimension_numbers = #tpu.dot_dimension_numbers<[1], [0], [0], [1], [0, 0, 1, 1], [], []>} : vector<8x768xbf16>, vector<768x512xbf16>, vector<8x512xf32> -> vector<8x512xf32>
    %c0_3 = arith.constant 0 : index
    %c0_4 = arith.constant 0 : index
    %4 = vector.load %arg3[%c0_3, %c0_4] : memref<1x512xf32, #tpu.memory_space<vmem>>, vector<1x512xf32>
    %5 = vector.broadcast %4 : vector<1x512xf32> to vector<8x512xf32>
    %6 = arith.addf %3, %5 : vector<8x512xf32>
    %cst_5 = arith.constant 0.000000e+00 : f32
    %7 = vector.broadcast %cst_5 : f32 to vector<8x512xf32>
    %8 = arith.maximumf %6, %7 : vector<8x512xf32>
    %9 = arith.truncf %8 : vector<8x512xf32> to vector<8x512xbf16>
    %c0_6 = arith.constant 0 : index
    %c0_7 = arith.constant 0 : index
    %10 = vector.load %arg4[%c0_6, %c0_7] : memref<512x256xbf16, #tpu.memory_space<vmem>>, vector<512x256xbf16>
    %cst_8 = arith.constant dense<0.000000e+00> : vector<8x256xf32>
    %11 = tpu.matmul %9, %10, %cst_8 {dimension_numbers = #tpu.dot_dimension_numbers<[1], [0], [0], [1], [0, 0, 1, 1], [], []>} : vector<8x512xbf16>, vector<512x256xbf16>, vector<8x256xf32> -> vector<8x256xf32>
    %c0_9 = arith.constant 0 : index
    %c0_10 = arith.constant 0 : index
    %12 = vector.load %arg5[%c0_9, %c0_10] : memref<1x256xf32, #tpu.memory_space<vmem>>, vector<1x256xf32>
    %13 = vector.broadcast %12 : vector<1x256xf32> to vector<8x256xf32>
    %14 = arith.addf %11, %13 : vector<8x256xf32>
    %cst_11 = arith.constant 0.000000e+00 : f32
    %15 = vector.broadcast %cst_11 : f32 to vector<8x256xf32>
    %16 = arith.maximumf %14, %15 : vector<8x256xf32>
    %17 = arith.truncf %16 : vector<8x256xf32> to vector<8x256xbf16>
    %c0_12 = arith.constant 0 : index
    %c0_13 = arith.constant 0 : index
    %18 = vector.load %arg6[%c0_12, %c0_13] : memref<256x1xbf16, #tpu.memory_space<vmem>>, vector<256x1xbf16>
    %cst_14 = arith.constant dense<0.000000e+00> : vector<8x1xf32>
    %19 = tpu.matmul %17, %18, %cst_14 {dimension_numbers = #tpu.dot_dimension_numbers<[1], [0], [0], [1], [0, 0, 1, 1], [], []>} : vector<8x256xbf16>, vector<256x1xbf16>, vector<8x1xf32> -> vector<8x1xf32>
    %c0_15 = arith.constant 0 : index
    %c0_16 = arith.constant 0 : index
    %20 = vector.load %arg7[%c0_15, %c0_16] : memref<1x1xf32, #tpu.memory_space<vmem>>, vector<1x1xf32>
    %21 = vector.broadcast %20 : vector<1x1xf32> to vector<8x1xf32>
    %22 = arith.addf %19, %21 : vector<8x1xf32>
    %c0_17 = arith.constant 0 : index
    %c0_18 = arith.constant 0 : index
    %23 = vector.load %arg8[%c0_17, %c0_18] : memref<8x1xf32, #tpu.memory_space<vmem>>, vector<8x1xf32>
    tpu.vector_store %arg8[%c0_17, %c0_18], %22 {strides = array<i32>} : memref<8x1xf32, #tpu.memory_space<vmem>>, vector<8x1xf32>,
    return
  }
  func.func @transform_0(%arg0: i32) -> (i32, i32) {
    %c0_i32 = arith.constant 0 : i32
    %c0_i32_0 = arith.constant 0 : i32
    return %arg0, %c0_i32 : i32, i32
  }
  func.func @transform_1(%arg0: i32) -> (i32, i32) {
    %c0_i32 = arith.constant 0 : i32
    %c0_i32_0 = arith.constant 0 : i32
    %c0_i32_1 = arith.constant 0 : i32
    return %c0_i32, %c0_i32_0 : i32, i32
  }
  func.func @transform_2(%arg0: i32) -> (i32, i32) {
    %c0_i32 = arith.constant 0 : i32
    %c0_i32_0 = arith.constant 0 : i32
    %c0_i32_1 = arith.constant 0 : i32
    return %c0_i32, %c0_i32_0 : i32, i32
  }
  func.func @transform_3(%arg0: i32) -> (i32, i32) {
    %c0_i32 = arith.constant 0 : i32
    %c0_i32_0 = arith.constant 0 : i32
    %c0_i32_1 = arith.constant 0 : i32
    return %c0_i32, %c0_i32_0 : i32, i32
  }
  func.func @transform_4(%arg0: i32) -> (i32, i32) {
    %c0_i32 = arith.constant 0 : i32
    %c0_i32_0 = arith.constant 0 : i32
    %c0_i32_1 = arith.constant 0 : i32
    return %c0_i32, %c0_i32_0 : i32, i32
  }
  func.func @transform_5(%arg0: i32) -> (i32, i32) {
    %c0_i32 = arith.constant 0 : i32
    %c0_i32_0 = arith.constant 0 : i32
    %c0_i32_1 = arith.constant 0 : i32
    return %c0_i32, %c0_i32_0 : i32, i32
  }
  func.func @transform_6(%arg0: i32) -> (i32, i32) {
    %c0_i32 = arith.constant 0 : i32
    %c0_i32_0 = arith.constant 0 : i32
    %c0_i32_1 = arith.constant 0 : i32
    return %c0_i32, %c0_i32_0 : i32, i32
  }
  func.func @transform_7(%arg0: i32) -> (i32, i32) {
    %c0_i32 = arith.constant 0 : i32
    %c0_i32_0 = arith.constant 0 : i32
    return %arg0, %c0_i32 : i32, i32
  }
}

</mosaic_0001>

<bundles_post_ra>
// kernel: tpu_custom_call.1
= control target key start
LH: loop header
LB: loop body
LE: loop exit
PB: predicated region body
PF: predicated region fallthrough
CT: control target
= control target key end

     0   :  { %s3127_s0 = inlined_call_operand.vmem [shape: f32[8,768], index: 0, kind: input, shape index: {}]   ;;  %s3128_s1 = inlined_call_operand.hbm [shape: bf16[768,512], index: 1, kind: input, shape index: {}]   ;;  %s3129_s2 = inlined_call_operand.vmem [shape: f32[1,512], index: 2, kind: input, shape index: {}]   ;;  %s3130_s3 = inlined_call_operand.hbm [shape: bf16[512,256], index: 3, kind: input, shape index: {}]   ;;  %s3131_s4 = inlined_call_operand.vmem [shape: f32[1,256], index: 4, kind: input, shape index: {}]   ;;  %s3132_s5 = inlined_call_operand.vmem [shape: bf16[256,1], index: 5, kind: input, shape index: {}]   ;;  %s3133_s6 = inlined_call_operand.<no memory space> [shape: f32[1,1], index: 6, kind: input, shape index: {}]   ;;  %s3134_s7 = inlined_call_operand.vmem [shape: f32[8,1], index: 7, kind: output, shape index: {}]  }
   0x1   :  { %v12_v0 = vstv %s3133_s6 }
   0x2   :  { %13 = vst [vmem:[#allocation2] sm:$0x1] %v12_v0 }
   0x3   :  { %14 = vsyncpa [#allocation4], 0 }
   0x4   :  { %15 = vsyncpa [#allocation6], 0  ;;  %s2935_s26 = smov [#allocation3]   ;;  %s2887_s30 = scalar_lea.hbm %s3128_s1, 24576 }
   0x5   :  { %s23_s27 = sshll.u32 %s2935_s26, 4  ;;  %p2888_p0 = scmp.ne.s32.totalorder %s3128_s1, %s2887_s30  ;;  %s24_s27 = int_to_ptr.vmem [resolvable:$true] %s23_s27 }
   0x6   :  { %p2891_p1 = scmp.lt.u32.totalorder %s2887_s30, %s3128_s1 }
   0x8   :  { %p2893_p2 = pnand %p2891_p1, %p2888_p0 }
   0xa   :  { %2896 = shalt.err (!%p2893_p2)
}
   0xb   :  { %s2897_s6 = scalar_lea.vmem %s24_s27, 24576  ;;  %p2902_p4 = scmp.lt.s32.totalorder %s24_s27, %s24_s27 }
   0xc   :  { %p2898_p3 = scmp.ne.s32.totalorder %s24_s27, %s2897_s6  ;;  %p2903_p5 = scmp.lt.s32.totalorder %s2897_s6, %s2897_s6 }
   0xe   :  { %p2904_p6 = por %p2903_p5, %p2902_p4 }
  0x10   :  { %p2905_p7 = pnand %p2904_p6, %p2898_p3 }
  0x12   :  { %2908 = shalt.err (!%p2905_p7)
}
  0x13   :  { %s2936_s12 = smov 256   ;;  %s2937_s13 = smov 16  }
  0x14   :  { %29 = dma.hbm_to_vmem [thread:$0]  %s3128_s1, 24576, %s24_s27, [#allocation4], %s2936_s12, %s2936_s12, %s2937_s13  }
  0x15   :  { %s2938_s16 = smov [#allocation5]   ;;  %s2909_s20 = scalar_lea.hbm %s3130_s3, 8192 }
  0x16   :  { %s37_s17 = sshll.u32 %s2938_s16, 4  ;;  %p2910_p8 = scmp.ne.s32.totalorder %s3130_s3, %s2909_s20  ;;  %s38_s17 = int_to_ptr.vmem [resolvable:$true] %s37_s17 }
  0x17   :  { %p2913_p9 = scmp.lt.u32.totalorder %s2909_s20, %s3130_s3 }
  0x19   :  { %p2915_p10 = pnand %p2913_p9, %p2910_p8 }
  0x1b   :  { %2918 = shalt.err (!%p2915_p10)
}
  0x1c   :  { %s2919_s25 = scalar_lea.vmem %s38_s17, 8192  ;;  %p2924_p12 = scmp.lt.s32.totalorder %s38_s17, %s38_s17 }
  0x1d   :  { %p2920_p11 = scmp.ne.s32.totalorder %s38_s17, %s2919_s25  ;;  %p2925_p13 = scmp.lt.s32.totalorder %s2919_s25, %s2919_s25 }
  0x1f   :  { %p2926_p0 = por %p2925_p13, %p2924_p12 }
  0x21   :  { %p2927_p1 = pnand %p2926_p0, %p2920_p11 }
  0x23   :  { %2930 = shalt.err (!%p2927_p1)
}
  0x24   :  { %s2939_s1 = smov 128   ;;  %s2940_s26 = smov 8  }
  0x25   :  { %43 = dma.hbm_to_vmem [thread:$0]  %s3130_s3, 8192, %s38_s17, [#allocation6], %s2939_s1, %s2939_s1, %s2940_s26  }
  0x26   :  { %2931 = dma.done.wait [#allocation4], 24576  }
  0x27   :  { %2932 = vsyncadd [#allocation4], 4294942720 }
  0x28   :  { %2933 = dma.done.wait [#allocation6], 8192  }
  0x29   :  { %2934 = vsyncadd [#allocation6], 4294959104  ;;  %v2487_v1 = vld [vmem:[#allocation3 + $0x4] ss:$16 sps:$4 sm:$0xff]   ;;  %v2491_v3 = vld [vmem:[#allocation3] ss:$16 sps:$4 sm:$0xff]  }
  0x2a   :  { %v2489_v2 = vld [vmem:[#allocation3 + $0x204] ss:$16 sps:$4 sm:$0xff]   ;;  %1243 = vmatprep.subr.bf16.mxu1 %v2487_v1  ;;  %v2492_v4 = vld [vmem:[#allocation3 + $0x200] ss:$16 sps:$4 sm:$0xff]   ;;  %vm2154_vm0 = vcmask 7168  }
  0x2b   :  { %1284 = vmatprep.subr.bf16.mxu0 %v2489_v2  ;;  %v2493_v5 = vld [vmem:[#allocation3 + $0x24] ss:$16 sps:$4 sm:$0xff]   ;;  %1244 = vmatpush1.bf16.msra.mxu1 %v2491_v3  ;;  %v2497_v7 = vld [vmem:[#allocation3 + $0x20] ss:$16 sps:$4 sm:$0xff]  }
  0x2c   :  { %1285 = vmatpush1.bf16.msra.mxu0 %v2492_v4  ;;  %v2495_v6 = vld [vmem:[#allocation3 + $0x224] ss:$16 sps:$4 sm:$0xff]   ;;  %1245 = vmatprep.subr.bf16.mxu1 %v2493_v5  ;;  %v2498_v8 = vld [vmem:[#allocation3 + $0x220] ss:$16 sps:$4 sm:$0xff]  }
  0x2d   :  { %1286 = vmatprep.subr.bf16.mxu0 %v2495_v6  ;;  %v2499_v9 = vld [vmem:[#allocation3 + $0x44] ss:$16 sps:$4 sm:$0xff]   ;;  %v2503_v11 = vld [vmem:[#allocation3 + $0x40] ss:$16 sps:$4 sm:$0xff]  }
  0x2e   :  { %v2501_v10 = vld [vmem:[#allocation3 + $0x244] ss:$16 sps:$4 sm:$0xff]   ;;  %v2504_v12 = vld [vmem:[#allocation3 + $0x240] ss:$16 sps:$4 sm:$0xff]  }
  0x2f   :  { %1246 = vmatpush1.bf16.msra.mxu1 %v2497_v7  ;;  %v2505_v13 = vld [vmem:[#allocation3 + $0x64] ss:$16 sps:$4 sm:$0xff]   ;;  %v2509_v15 = vld [vmem:[#allocation3 + $0x60] ss:$16 sps:$4 sm:$0xff]  }
  0x30   :  { %1287 = vmatpush1.bf16.msra.mxu0 %v2498_v8  ;;  %1247 = vmatprep.subr.bf16.mxu1 %v2499_v9  ;;  %v2507_v14 = vld [vmem:[#allocation3 + $0x264] ss:$16 sps:$4 sm:$0xff]   ;;  %v2510_v16 = vld [vmem:[#allocation3 + $0x260] ss:$16 sps:$4 sm:$0xff]   ;;  %v2588_v8 = vld [vmem:[#allocation3 + $0xc] ss:$16 sps:$4 sm:$0xff]  }
  0x31   :  { %1288 = vmatprep.subr.bf16.mxu0 %v2501_v10  ;;  %v2511_v17 = vld [vmem:[#allocation3 + $0x84] ss:$16 sps:$4 sm:$0xff]   ;;  %v2515_v19 = vld [vmem:[#allocation3 + $0x80] ss:$16 sps:$4 sm:$0xff]  }
  0x32   :  { %v2513_v18 = vld [vmem:[#allocation3 + $0x284] ss:$16 sps:$4 sm:$0xff]   ;;  %v2516_v20 = vld [vmem:[#allocation3 + $0x280] ss:$16 sps:$4 sm:$0xff]  }
  0x33   :  { %1248 = vmatpush1.bf16.msra.mxu1 %v2503_v11  ;;  %v2517_v21 = vld [vmem:[#allocation3 + $0xa4] ss:$16 sps:$4 sm:$0xff]   ;;  %v2521_v23 = vld [vmem:[#allocation3 + $0xa0] ss:$16 sps:$4 sm:$0xff]   ;;  %v2586_v11 = vld [vmem:[#allocation3 + $0x8] ss:$16 sps:$4 sm:$0xff]  }
  0x34   :  { %1289 = vmatpush1.bf16.msra.mxu0 %v2504_v12  ;;  %1249 = vmatprep.subr.bf16.mxu1 %v2505_v13  ;;  %v2519_v22 = vld [vmem:[#allocation3 + $0x2a4] ss:$16 sps:$4 sm:$0xff]   ;;  %v2522_v24 = vld [vmem:[#allocation3 + $0x2a0] ss:$16 sps:$4 sm:$0xff]  }
  0x35   :  { %1290 = vmatprep.subr.bf16.mxu0 %v2507_v14  ;;  %v2523_v25 = vld [vmem:[#allocation3 + $0xc4] ss:$16 sps:$4 sm:$0xff]   ;;  %v2527_v27 = vld [vmem:[#allocation3 + $0xc0] ss:$16 sps:$4 sm:$0xff]   ;;  %v2594_v14 = vld [vmem:[#allocation3 + $0x2c] ss:$16 sps:$4 sm:$0xff]  }
  0x36   :  { %v2525_v26 = vld [vmem:[#allocation3 + $0x2c4] ss:$16 sps:$4 sm:$0xff]   ;;  %v2528_v28 = vld [vmem:[#allocation3 + $0x2c0] ss:$16 sps:$4 sm:$0xff]  }
  0x37   :  { %1250 = vmatpush1.bf16.msra.mxu1 %v2509_v15  ;;  %v2529_v29 = vld [vmem:[#allocation3 + $0xe4] ss:$16 sps:$4 sm:$0xff]   ;;  %v2533_v31 = vld [vmem:[#allocation3 + $0xe0] ss:$16 sps:$4 sm:$0xff]  }
  0x38   :  { %1291 = vmatpush1.bf16.msra.mxu0 %v2510_v16  ;;  %1251 = vmatprep.subr.bf16.mxu1 %v2511_v17  ;;  %v2531_v30 = vld [vmem:[#allocation3 + $0x2e4] ss:$16 sps:$4 sm:$0xff]   ;;  %v2534_v32 = vld [vmem:[#allocation3 + $0x2e0] ss:$16 sps:$4 sm:$0xff]   ;;  %v2592_v16 = vld [vmem:[#allocation3 + $0x28] ss:$16 sps:$4 sm:$0xff]  }
  0x39   :  { %1292 = vmatprep.subr.bf16.mxu0 %v2513_v18  ;;  %v2535_v33 = vld [vmem:[#allocation3 + $0x104] ss:$16 sps:$4 sm:$0xff]   ;;  %v2539_v35 = vld [vmem:[#allocation3 + $0x100] ss:$16 sps:$4 sm:$0xff]   ;;  %v2600_v18 = vld [vmem:[#allocation3 + $0x4c] ss:$16 sps:$4 sm:$0xff]  }
  0x3a   :  { %v2537_v34 = vld [vmem:[#allocation3 + $0x304] ss:$16 sps:$4 sm:$0xff]   ;;  %v2540_v36 = vld [vmem:[#allocation3 + $0x300] ss:$16 sps:$4 sm:$0xff]  }
  0x3b   :  { %1252 = vmatpush1.bf16.msra.mxu1 %v2515_v19  ;;  %v2541_v37 = vld [vmem:[#allocation3 + $0x124] ss:$16 sps:$4 sm:$0xff]   ;;  %v2545_v39 = vld [vmem:[#allocation3 + $0x120] ss:$16 sps:$4 sm:$0xff]  }
  0x3c   :  { %1293 = vmatpush1.bf16.msra.mxu0 %v2516_v20  ;;  %1253 = vmatprep.subr.bf16.mxu1 %v2517_v21  ;;  %v2543_v38 = vld [vmem:[#allocation3 + $0x324] ss:$16 sps:$4 sm:$0xff]   ;;  %v2546_v40 = vld [vmem:[#allocation3 + $0x320] ss:$16 sps:$4 sm:$0xff]   ;;  %v2598_v20 = vld [vmem:[#allocation3 + $0x48] ss:$16 sps:$4 sm:$0xff]  }
  0x3d   :  { %1294 = vmatprep.subr.bf16.mxu0 %v2519_v22  ;;  %v2547_v41 = vld [vmem:[#allocation3 + $0x144] ss:$16 sps:$4 sm:$0xff]   ;;  %v2551_v43 = vld [vmem:[#allocation3 + $0x140] ss:$16 sps:$4 sm:$0xff]   ;;  %v2606_v22 = vld [vmem:[#allocation3 + $0x6c] ss:$16 sps:$4 sm:$0xff]  }
  0x3e   :  { %v2549_v42 = vld [vmem:[#allocation3 + $0x344] ss:$16 sps:$4 sm:$0xff]   ;;  %v2552_v44 = vld [vmem:[#allocation3 + $0x340] ss:$16 sps:$4 sm:$0xff]  }
  0x3f   :  { %1254 = vmatpush1.bf16.msra.mxu1 %v2521_v23  ;;  %v2553_v45 = vld [vmem:[#allocation3 + $0x164] ss:$16 sps:$4 sm:$0xff]   ;;  %v2557_v48 = vld [vmem:[#allocation3 + $0x160] ss:$16 sps:$4 sm:$0xff]  }
  0x40   :  { %1295 = vmatpush1.bf16.msra.mxu0 %v2522_v24  ;;  %1255 = vmatprep.subr.bf16.mxu1 %v2523_v25  ;;  %v2555_v46 = vld [vmem:[#allocation3 + $0x364] ss:$16 sps:$4 sm:$0xff]   ;;  %v2558_v51 = vld [vmem:[#allocation3 + $0x360] ss:$16 sps:$4 sm:$0xff]   ;;  %v2604_v24 = vld [vmem:[#allocation3 + $0x68] ss:$16 sps:$4 sm:$0xff]  }
  0x41   :  { %1296 = vmatprep.subr.bf16.mxu0 %v2525_v26  ;;  %v58_v47 = vld [vmem:[%s3127_s0 + $0x8] sm:$0xff]  ;;  %v60_v50 = vld [vmem:[%s3127_s0 + $0x18] sm:$0xff]  ;;  %v2563_v55 = vld [vmem:[#allocation3 + $0x180] ss:$16 sps:$4 sm:$0xff]  }
  0x42   :  { %v3011_v49 = vpack.c.bf16 %v58_v47, %v58_v47  ;;  %v2559_v52 = vld [vmem:[#allocation3 + $0x184] ss:$16 sps:$4 sm:$0xff]   ;;  %v3016_v53 = vpack.c.bf16 %v60_v50, %v60_v50  ;;  %v2564_v56 = vld [vmem:[#allocation3 + $0x380] ss:$16 sps:$4 sm:$0xff]   ;;  %v2612_v26 = vld [vmem:[#allocation3 + $0x8c] ss:$16 sps:$4 sm:$0xff]  }
  0x43   :  { %1256 = vmatpush1.bf16.msra.mxu1 %v2527_v27  ;;  %v2561_v54 = vld [vmem:[#allocation3 + $0x384] ss:$16 sps:$4 sm:$0xff]   ;;  %v2569_v59 = vld [vmem:[#allocation3 + $0x1a0] ss:$16 sps:$4 sm:$0xff]   ;;  %v2640_v50 = vld [vmem:[#allocation3 + $0x128] ss:$16 sps:$4 sm:$0xff]  }
  0x44   :  { %1297 = vmatpush1.bf16.msra.mxu0 %v2528_v28  ;;  %1257 = vmatprep.subr.bf16.mxu1 %v2529_v29  ;;  %v2565_v57 = vld [vmem:[#allocation3 + $0x1a4] ss:$16 sps:$4 sm:$0xff]   ;;  %v2570_v60 = vld [vmem:[#allocation3 + $0x3a0] ss:$16 sps:$4 sm:$0xff]   ;;  %v2610_v28 = vld [vmem:[#allocation3 + $0x88] ss:$16 sps:$4 sm:$0xff]  }
  0x45   :  { %1298 = vmatprep.subr.bf16.mxu0 %v2531_v30  ;;  %1275 = vmatprep.mubr.bf16.mxu1 %v3011_v49  ;;  %v2567_v58 = vld [vmem:[#allocation3 + $0x3a4] ss:$16 sps:$4 sm:$0xff]   ;;  %v2575_v63 = vld [vmem:[#allocation3 + $0x1c0] ss:$16 sps:$4 sm:$0xff]   ;;  %v2618_v30 = vld [vmem:[#allocation3 + $0xac] ss:$16 sps:$4 sm:$0xff]  }
  0x46   :  { %1316 = vmatprep.mubr.bf16.mxu0 %v3016_v53  ;;  %v2571_v61 = vld [vmem:[#allocation3 + $0x1c4] ss:$16 sps:$4 sm:$0xff]   ;;  %v2576_v0 = vld [vmem:[#allocation3 + $0x3c0] ss:$16 sps:$4 sm:$0xff]  }
  0x47   :  { %1258 = vmatpush1.bf16.msra.mxu1 %v2533_v31  ;;  %v2573_v62 = vld [vmem:[#allocation3 + $0x3c4] ss:$16 sps:$4 sm:$0xff]   ;;  %v2581_v3 = vld [vmem:[#allocation3 + $0x1e0] ss:$16 sps:$4 sm:$0xff]  }
  0x48   :  { %1299 = vmatpush1.bf16.msra.mxu0 %v2534_v32  ;;  %1259 = vmatprep.subr.bf16.mxu1 %v2535_v33  ;;  %v2577_v1 = vld [vmem:[#allocation3 + $0x1e4] ss:$16 sps:$4 sm:$0xff]   ;;  %v2582_v4 = vld [vmem:[#allocation3 + $0x3e0] ss:$16 sps:$4 sm:$0xff]   ;;  %v2616_v32 = vld [vmem:[#allocation3 + $0xa8] ss:$16 sps:$4 sm:$0xff]  }
  0x49   :  { %1300 = vmatprep.subr.bf16.mxu0 %v2537_v34  ;;  %v2579_v2 = vld [vmem:[#allocation3 + $0x3e4] ss:$16 sps:$4 sm:$0xff]   ;;  %v2583_v10 = vld [vmem:[#allocation3 + $0x400] ss:$16 sps:$4 sm:$0xff]   ;;  %v2624_v34 = vld [vmem:[#allocation3 + $0xcc] ss:$16 sps:$4 sm:$0xff]  }
  0x4a   :  { %v57_v5 = vld [vmem:[%s3127_s0] sm:$0xff]  ;;  %v59_v7 = vld [vmem:[%s3127_s0 + $0x10] sm:$0xff] }
  0x4b   :  { %1260 = vmatpush1.bf16.msra.mxu1 %v2539_v35  ;;  %v2585_v6 = vld [vmem:[#allocation3 + $0x404] ss:$16 sps:$4 sm:$0xff]   ;;  %v3026_v9 = vpack.c.bf16 %v57_v5, %v57_v5  ;;  %v3028_v12 = vpack.c.bf16 %v59_v7, %v59_v7  ;;  %v2589_v15 = vld [vmem:[#allocation3 + $0x420] ss:$16 sps:$4 sm:$0xff]   ;;  %v2672_v5 = vld [vmem:[#allocation3 + $0x1cc] ss:$16 sps:$4 sm:$0xff]  }
  0x4c   :  { %1301 = vmatpush1.bf16.msra.mxu0 %v2540_v36  ;;  %1261 = vmatprep.subr.bf16.mxu1 %v2541_v37  ;;  %v2591_v13 = vld [vmem:[#allocation3 + $0x424] ss:$16 sps:$4 sm:$0xff]   ;;  %v2595_v19 = vld [vmem:[#allocation3 + $0x440] ss:$16 sps:$4 sm:$0xff]   ;;  %v2670_v7 = vld [vmem:[#allocation3 + $0x1c8] ss:$16 sps:$4 sm:$0xff]  }
  0x4d   :  { %1302 = vmatprep.subr.bf16.mxu0 %v2543_v38  ;;  %v2597_v17 = vld [vmem:[#allocation3 + $0x444] ss:$16 sps:$4 sm:$0xff]   ;;  %v2601_v23 = vld [vmem:[#allocation3 + $0x460] ss:$16 sps:$4 sm:$0xff]   ;;  %v2622_v38 = vld [vmem:[#allocation3 + $0xc8] ss:$16 sps:$4 sm:$0xff]  }
  0x4e   :  { %v2603_v21 = vld [vmem:[#allocation3 + $0x464] ss:$16 sps:$4 sm:$0xff]   ;;  %v2607_v27 = vld [vmem:[#allocation3 + $0x480] ss:$16 sps:$4 sm:$0xff]  }
  0x4f   :  { %1262 = vmatpush1.bf16.msra.mxu1 %v2545_v39  ;;  %v2609_v25 = vld [vmem:[#allocation3 + $0x484] ss:$16 sps:$4 sm:$0xff]   ;;  %v2613_v31 = vld [vmem:[#allocation3 + $0x4a0] ss:$16 sps:$4 sm:$0xff]  }
  0x50   :  { %1303 = vmatpush1.bf16.msra.mxu0 %v2546_v40  ;;  %1263 = vmatprep.subr.bf16.mxu1 %v2547_v41  ;;  %v2615_v29 = vld [vmem:[#allocation3 + $0x4a4] ss:$16 sps:$4 sm:$0xff]   ;;  %v2619_v37 = vld [vmem:[#allocation3 + $0x4c0] ss:$16 sps:$4 sm:$0xff]   ;;  %v2630_v40 = vld [vmem:[#allocation3 + $0xec] ss:$16 sps:$4 sm:$0xff]  }
  0x51   :  { %1304 = vmatprep.subr.bf16.mxu0 %v2549_v42  ;;  %v2621_v33 = vld [vmem:[#allocation3 + $0x4c4] ss:$16 sps:$4 sm:$0xff]   ;;  %v2625_v41 = vld [vmem:[#allocation3 + $0x4e0] ss:$16 sps:$4 sm:$0xff]   ;;  %v2628_v42 = vld [vmem:[#allocation3 + $0xe8] ss:$16 sps:$4 sm:$0xff]  }
  0x52   :  { %v62_v35 = vld [vmem:[%s3127_s0 + $0x28] sm:$0xff] }
  0x53   :  { %1264 = vmatpush1.bf16.msra.mxu1 %v2551_v43  ;;  %v3036_v36 = vpack.c.bf16 %v62_v35, %v62_v35  ;;  %v2627_v39 = vld [vmem:[#allocation3 + $0x4e4] ss:$16 sps:$4 sm:$0xff]  }
  0x54   :  { %1305 = vmatpush1.bf16.msra.mxu0 %v2552_v44  ;;  %1265 = vmatprep.subr.bf16.mxu1 %v2553_v45  ;;  %v2633_v43 = vld [vmem:[#allocation3 + $0x504] ss:$16 sps:$4 sm:$0xff]   ;;  %v2636_v44 = vld [vmem:[#allocation3 + $0x10c] ss:$16 sps:$4 sm:$0xff]   ;;  %v2631_v45 = vld [vmem:[#allocation3 + $0x500] ss:$16 sps:$4 sm:$0xff]  }
  0x55   :  { %1306 = vmatprep.subr.bf16.mxu0 %v2555_v46  ;;  %v2634_v46 = vld [vmem:[#allocation3 + $0x108] ss:$16 sps:$4 sm:$0xff]   ;;  %v2639_v47 = vld [vmem:[#allocation3 + $0x524] ss:$16 sps:$4 sm:$0xff]  }
  0x56   :  { %v2783_v35 = vld [vmem:[#allocation5 + $0x24] ss:$8 sps:$4 sm:$0xff]  }
  0x57   :  { %1266 = vmatpush1.bf16.msra.mxu1 %v2557_v48  ;;  %v2642_v48 = vld [vmem:[#allocation3 + $0x12c] ss:$16 sps:$4 sm:$0xff]  }
  0x58   :  { %1307 = vmatpush1.bf16.msra.mxu0 %v2558_v51  ;;  %1267 = vmatprep.subr.bf16.mxu1 %v2559_v52  ;;  %v2645_v51 = vld [vmem:[#allocation3 + $0x544] ss:$16 sps:$4 sm:$0xff]   ;;  %v2648_v52 = vld [vmem:[#allocation3 + $0x14c] ss:$16 sps:$4 sm:$0xff]  }
  0x59   :  { %1308 = vmatprep.subr.bf16.mxu0 %v2561_v54  ;;  %v2643_v54 = vld [vmem:[#allocation3 + $0x540] ss:$16 sps:$4 sm:$0xff]  }
  0x5b   :  { %1268 = vmatpush1.bf16.msra.mxu1 %v2563_v55  ;;  %v2646_v55 = vld [vmem:[#allocation3 + $0x148] ss:$16 sps:$4 sm:$0xff]  }
  0x5c   :  { %1309 = vmatpush1.bf16.msra.mxu0 %v2564_v56  ;;  %1269 = vmatprep.subr.bf16.mxu1 %v2565_v57  ;;  %v2651_v56 = vld [vmem:[#allocation3 + $0x564] ss:$16 sps:$4 sm:$0xff]   ;;  %v2654_v57 = vld [vmem:[#allocation3 + $0x16c] ss:$16 sps:$4 sm:$0xff]  }
  0x5d   :  { %1310 = vmatprep.subr.bf16.mxu0 %v2567_v58  ;;  %v2649_v58 = vld [vmem:[#allocation3 + $0x560] ss:$16 sps:$4 sm:$0xff]  }
  0x5f   :  { %1270 = vmatpush1.bf16.msra.mxu1 %v2569_v59  ;;  %v2652_v59 = vld [vmem:[#allocation3 + $0x168] ss:$16 sps:$4 sm:$0xff]  }
  0x60   :  { %1311 = vmatpush1.bf16.msra.mxu0 %v2570_v60  ;;  %1271 = vmatprep.subr.bf16.mxu1 %v2571_v61  ;;  %v2657_v60 = vld [vmem:[#allocation3 + $0x584] ss:$16 sps:$4 sm:$0xff]   ;;  %v2660_v61 = vld [vmem:[#allocation3 + $0x18c] ss:$16 sps:$4 sm:$0xff]  }
  0x61   :  { %1312 = vmatprep.subr.bf16.mxu0 %v2573_v62  ;;  %v2655_v62 = vld [vmem:[#allocation3 + $0x580] ss:$16 sps:$4 sm:$0xff]  }
  0x63   :  { %1272 = vmatpush1.bf16.msra.mxu1 %v2575_v63  ;;  %v2658_v63 = vld [vmem:[#allocation3 + $0x188] ss:$16 sps:$4 sm:$0xff]  }
  0x64   :  { %1313 = vmatpush1.bf16.msra.mxu0 %v2576_v0  ;;  %1273 = vmatprep.subr.bf16.mxu1 %v2577_v1  ;;  %v2663_v0 = vld [vmem:[#allocation3 + $0x5a4] ss:$16 sps:$4 sm:$0xff]   ;;  %v2666_v1 = vld [vmem:[#allocation3 + $0x1ac] ss:$16 sps:$4 sm:$0xff]  }
  0x65   :  { %1314 = vmatprep.subr.bf16.mxu0 %v2579_v2  ;;  %v2661_v2 = vld [vmem:[#allocation3 + $0x5a0] ss:$16 sps:$4 sm:$0xff]  }
  0x67   :  { %1274 = vmatpush1.bf16.msra.mxu1 %v2581_v3  ;;  %v2664_v3 = vld [vmem:[#allocation3 + $0x1a8] ss:$16 sps:$4 sm:$0xff]  }
  0x68   :  { %1315 = vmatpush1.bf16.msra.mxu0 %v2582_v4  ;;  %1366 = vmatprep.subr.bf16.mxu1 %v2588_v8  ;;  %v2669_v4 = vld [vmem:[#allocation3 + $0x5c4] ss:$16 sps:$4 sm:$0xff]  }
  0x69   :  { %1325 = vmatprep.subr.bf16.mxu0 %v2585_v6  ;;  %v2667_v6 = vld [vmem:[#allocation3 + $0x5c0] ss:$16 sps:$4 sm:$0xff]   ;;  %v2675_v8 = vld [vmem:[#allocation3 + $0x5e4] ss:$16 sps:$4 sm:$0xff]  }
  0x6a   :  { %1276 = vmatmul.mubr.bf16.vlgmr.msra.gmra.mrb[0].mxu1 %v3026_v9 }
  0x6b   :  { %1317 = vmatmul.mubr.bf16.vlgmr.msra.gmra.mrb[0].mxu0 %v3028_v12  ;;  %1367 = vmatpush1.bf16.msra.mxu1 %v2586_v11  ;;  %v2673_v11 = vld [vmem:[#allocation3 + $0x5e0] ss:$16 sps:$4 sm:$0xff]  }
  0x6c   :  { %1326 = vmatpush1.bf16.msra.mxu0 %v2583_v10  ;;  %1368 = vmatprep.subr.bf16.mxu1 %v2594_v14  ;;  %v2678_v10 = vld [vmem:[#allocation3 + $0x1ec] ss:$16 sps:$4 sm:$0xff]  }
  0x6d   :  { %1327 = vmatprep.subr.bf16.mxu0 %v2591_v13  ;;  %1398 = vmatprep.mubr.bf16.mxu1 %v3011_v49  ;;  %v2637_v49 = vld [vmem:[#allocation3 + $0x520] ss:$16 sps:$4 sm:$0xff]   ;;  %v2676_v13 = vld [vmem:[#allocation3 + $0x1e8] ss:$16 sps:$4 sm:$0xff]  }
  0x6e   :  { %1357 = vmatprep.mubr.bf16.mxu0 %v3036_v36  ;;  %v61_v14 = vld [vmem:[%s3127_s0 + $0x20] sm:$0xff] }
  0x6f   :  { %1369 = vmatpush1.bf16.msra.mxu1 %v2592_v16  ;;  %v3042_v16 = vpack.c.bf16 %v61_v14, %v61_v14  ;;  %v2808_v14 = vld [vmem:[#allocation5 + $0xb0] ss:$8 sps:$4 sm:$0xff]  }
  0x70   :  { %1328 = vmatpush1.bf16.msra.mxu0 %v2589_v15  ;;  %1370 = vmatprep.subr.bf16.mxu1 %v2600_v18  ;;  %v2681_v15 = vld [vmem:[#allocation3 + $0x20c] ss:$16 sps:$4 sm:$0xff]  }
  0x71   :  { %1329 = vmatprep.subr.bf16.mxu0 %v2597_v17  ;;  %v2679_v17 = vld [vmem:[#allocation3 + $0x208] ss:$16 sps:$4 sm:$0xff]   ;;  %v2684_v18 = vld [vmem:[#allocation3 + $0x22c] ss:$16 sps:$4 sm:$0xff]  }
  0x73   :  { %1371 = vmatpush1.bf16.msra.mxu1 %v2598_v20  ;;  %v2687_v20 = vld [vmem:[#allocation3 + $0x24c] ss:$16 sps:$4 sm:$0xff]  }
  0x74   :  { %1330 = vmatpush1.bf16.msra.mxu0 %v2595_v19  ;;  %1372 = vmatprep.subr.bf16.mxu1 %v2606_v22  ;;  %v2682_v19 = vld [vmem:[#allocation3 + $0x228] ss:$16 sps:$4 sm:$0xff]   ;;  %v2690_v22 = vld [vmem:[#allocation3 + $0x26c] ss:$16 sps:$4 sm:$0xff]  }
  0x75   :  { %1331 = vmatprep.subr.bf16.mxu0 %v2603_v21  ;;  %v2685_v21 = vld [vmem:[#allocation3 + $0x248] ss:$16 sps:$4 sm:$0xff]  }
  0x77   :  { %1373 = vmatpush1.bf16.msra.mxu1 %v2604_v24  ;;  %v2693_v24 = vld [vmem:[#allocation3 + $0x28c] ss:$16 sps:$4 sm:$0xff]  }
  0x78   :  { %1332 = vmatpush1.bf16.msra.mxu0 %v2601_v23  ;;  %1374 = vmatprep.subr.bf16.mxu1 %v2612_v26  ;;  %v2688_v23 = vld [vmem:[#allocation3 + $0x268] ss:$16 sps:$4 sm:$0xff]   ;;  %v2696_v26 = vld [vmem:[#allocation3 + $0x2ac] ss:$16 sps:$4 sm:$0xff]  }
  0x79   :  { %1333 = vmatprep.subr.bf16.mxu0 %v2609_v25  ;;  %v2691_v25 = vld [vmem:[#allocation3 + $0x288] ss:$16 sps:$4 sm:$0xff]  }
  0x7b   :  { %1375 = vmatpush1.bf16.msra.mxu1 %v2610_v28  ;;  %v2699_v28 = vld [vmem:[#allocation3 + $0x2cc] ss:$16 sps:$4 sm:$0xff]  }
  0x7c   :  { %1334 = vmatpush1.bf16.msra.mxu0 %v2607_v27  ;;  %1376 = vmatprep.subr.bf16.mxu1 %v2618_v30  ;;  %v2694_v27 = vld [vmem:[#allocation3 + $0x2a8] ss:$16 sps:$4 sm:$0xff]   ;;  %v2777_v30 = vld [vmem:[#allocation5 + $0x4] ss:$8 sps:$4 sm:$0xff]  }
  0x7d   :  { %1335 = vmatprep.subr.bf16.mxu0 %v2615_v29  ;;  %v2775_v29 = vld [vmem:[#allocation5] ss:$8 sps:$4 sm:$0xff]  }
  0x7f   :  { %1377 = vmatpush1.bf16.msra.mxu1 %v2616_v32  ;;  %v2700_v32 = vld [vmem:[#allocation3 + $0x2e8] ss:$16 sps:$4 sm:$0xff]  }
  0x80   :  { %1336 = vmatpush1.bf16.msra.mxu0 %v2613_v31  ;;  %1378 = vmatprep.subr.bf16.mxu1 %v2624_v34  ;;  %v2780_v31 = vld [vmem:[#allocation5 + $0x14] ss:$8 sps:$4 sm:$0xff]  }
  0x81   :  { %1337 = vmatprep.subr.bf16.mxu0 %v2621_v33  ;;  %v2778_v33 = vld [vmem:[#allocation5 + $0x10] ss:$8 sps:$4 sm:$0xff]   ;;  %v2705_v34 = vld [vmem:[#allocation3 + $0x30c] ss:$16 sps:$4 sm:$0xff]  }
  0x83   :  { %1379 = vmatpush1.bf16.msra.mxu1 %v2622_v38  ;;  %v2781_v38 = vld [vmem:[#allocation5 + $0x20] ss:$8 sps:$4 sm:$0xff]  }
  0x84   :  { %1338 = vmatpush1.bf16.msra.mxu0 %v2619_v37  ;;  %1380 = vmatprep.subr.bf16.mxu1 %v2630_v40  ;;  %v2703_v37 = vld [vmem:[#allocation3 + $0x308] ss:$16 sps:$4 sm:$0xff]   ;;  %v2786_v40 = vld [vmem:[#allocation5 + $0x34] ss:$8 sps:$4 sm:$0xff]  }
  0x85   :  { %1339 = vmatprep.subr.bf16.mxu0 %v2627_v39  ;;  %v2708_v39 = vld [vmem:[#allocation3 + $0x32c] ss:$16 sps:$4 sm:$0xff]  }
  0x87   :  { %1381 = vmatpush1.bf16.msra.mxu1 %v2628_v42  ;;  %v2784_v42 = vld [vmem:[#allocation5 + $0x30] ss:$8 sps:$4 sm:$0xff]  }
  0x88   :  { %1340 = vmatpush1.bf16.msra.mxu0 %v2625_v41  ;;  %1382 = vmatprep.subr.bf16.mxu1 %v2636_v44  ;;  %v2706_v41 = vld [vmem:[#allocation3 + $0x328] ss:$16 sps:$4 sm:$0xff]   ;;  %v2789_v44 = vld [vmem:[#allocation5 + $0x44] ss:$8 sps:$4 sm:$0xff]  }
  0x89   :  { %1341 = vmatprep.subr.bf16.mxu0 %v2633_v43  ;;  %v2711_v43 = vld [vmem:[#allocation3 + $0x34c] ss:$16 sps:$4 sm:$0xff]  }
  0x8b   :  { %1383 = vmatpush1.bf16.msra.mxu1 %v2634_v46  ;;  %v2787_v46 = vld [vmem:[#allocation5 + $0x40] ss:$8 sps:$4 sm:$0xff]  }
  0x8c   :  { %1342 = vmatpush1.bf16.msra.mxu0 %v2631_v45  ;;  %1384 = vmatprep.subr.bf16.mxu1 %v2642_v48  ;;  %v2709_v45 = vld [vmem:[#allocation3 + $0x348] ss:$16 sps:$4 sm:$0xff]   ;;  %v2792_v48 = vld [vmem:[#allocation5 + $0x54] ss:$8 sps:$4 sm:$0xff]  }
  0x8d   :  { %1343 = vmatprep.subr.bf16.mxu0 %v2639_v47  ;;  %v2714_v47 = vld [vmem:[#allocation3 + $0x36c] ss:$16 sps:$4 sm:$0xff]  }
  0x8f   :  { %1385 = vmatpush1.bf16.msra.mxu1 %v2640_v50  ;;  %v2790_v50 = vld [vmem:[#allocation5 + $0x50] ss:$8 sps:$4 sm:$0xff]  }
  0x90   :  { %1344 = vmatpush1.bf16.msra.mxu0 %v2637_v49  ;;  %1386 = vmatprep.subr.bf16.mxu1 %v2648_v52  ;;  %v2712_v49 = vld [vmem:[#allocation3 + $0x368] ss:$16 sps:$4 sm:$0xff]   ;;  %v2795_v52 = vld [vmem:[#allocation5 + $0x64] ss:$8 sps:$4 sm:$0xff]  }
  0x91   :  { %1345 = vmatprep.subr.bf16.mxu0 %v2645_v51  ;;  %v2717_v51 = vld [vmem:[#allocation3 + $0x38c] ss:$16 sps:$4 sm:$0xff]  }
  0x93   :  { %1387 = vmatpush1.bf16.msra.mxu1 %v2646_v55  ;;  %v2793_v55 = vld [vmem:[#allocation5 + $0x60] ss:$8 sps:$4 sm:$0xff]  }
  0x94   :  { %1346 = vmatpush1.bf16.msra.mxu0 %v2643_v54  ;;  %1388 = vmatprep.subr.bf16.mxu1 %v2654_v57  ;;  %v2715_v54 = vld [vmem:[#allocation3 + $0x388] ss:$16 sps:$4 sm:$0xff]   ;;  %v2798_v57 = vld [vmem:[#allocation5 + $0x74] ss:$8 sps:$4 sm:$0xff]  }
  0x95   :  { %1347 = vmatprep.subr.bf16.mxu0 %v2651_v56  ;;  %v2720_v56 = vld [vmem:[#allocation3 + $0x3ac] ss:$16 sps:$4 sm:$0xff]  }
  0x97   :  { %1389 = vmatpush1.bf16.msra.mxu1 %v2652_v59  ;;  %v2796_v59 = vld [vmem:[#allocation5 + $0x70] ss:$8 sps:$4 sm:$0xff]  }
  0x98   :  { %1348 = vmatpush1.bf16.msra.mxu0 %v2649_v58  ;;  %1390 = vmatprep.subr.bf16.mxu1 %v2660_v61  ;;  %v2718_v58 = vld [vmem:[#allocation3 + $0x3a8] ss:$16 sps:$4 sm:$0xff]   ;;  %v2801_v61 = vld [vmem:[#allocation5 + $0x84] ss:$8 sps:$4 sm:$0xff]  }
  0x99   :  { %1349 = vmatprep.subr.bf16.mxu0 %v2657_v60  ;;  %v2723_v60 = vld [vmem:[#allocation3 + $0x3cc] ss:$16 sps:$4 sm:$0xff]  }
  0x9b   :  { %1391 = vmatpush1.bf16.msra.mxu1 %v2658_v63  ;;  %v2799_v63 = vld [vmem:[#allocation5 + $0x80] ss:$8 sps:$4 sm:$0xff]  }
  0x9c   :  { %1350 = vmatpush1.bf16.msra.mxu0 %v2655_v62  ;;  %1392 = vmatprep.subr.bf16.mxu1 %v2666_v1  ;;  %v2721_v62 = vld [vmem:[#allocation3 + $0x3c8] ss:$16 sps:$4 sm:$0xff]   ;;  %v2804_v1 = vld [vmem:[#allocation5 + $0x94] ss:$8 sps:$4 sm:$0xff]  }
  0x9d   :  { %1351 = vmatprep.subr.bf16.mxu0 %v2663_v0  ;;  %v2726_v0 = vld [vmem:[#allocation3 + $0x3ec] ss:$16 sps:$4 sm:$0xff]  }
  0x9f   :  { %1393 = vmatpush1.bf16.msra.mxu1 %v2664_v3  ;;  %v2802_v3 = vld [vmem:[#allocation5 + $0x90] ss:$8 sps:$4 sm:$0xff]  }
  0xa0   :  { %1352 = vmatpush1.bf16.msra.mxu0 %v2661_v2  ;;  %1394 = vmatprep.subr.bf16.mxu1 %v2672_v5  ;;  %v2724_v2 = vld [vmem:[#allocation3 + $0x3e8] ss:$16 sps:$4 sm:$0xff]   ;;  %v2807_v5 = vld [vmem:[#allocation5 + $0xa4] ss:$8 sps:$4 sm:$0xff]  }
  0xa1   :  { %1353 = vmatprep.subr.bf16.mxu0 %v2669_v4  ;;  %v2729_v4 = vld [vmem:[#allocation3 + $0x40c] ss:$16 sps:$4 sm:$0xff]  }
  0xa3   :  { %1395 = vmatpush1.bf16.msra.mxu1 %v2670_v7  ;;  %v2732_v7 = vld [vmem:[#allocation3 + $0x42c] ss:$16 sps:$4 sm:$0xff]  }
  0xa4   :  { %1354 = vmatpush1.bf16.msra.mxu0 %v2667_v6  ;;  %1396 = vmatprep.subr.bf16.mxu1 %v2678_v10  ;;  %v2727_v6 = vld [vmem:[#allocation3 + $0x408] ss:$16 sps:$4 sm:$0xff]   ;;  %v2810_v10 = vld [vmem:[#allocation5 + $0xb4] ss:$8 sps:$4 sm:$0xff]  }
  0xa5   :  { %1355 = vmatprep.subr.bf16.mxu0 %v2675_v8  ;;  %v2805_v8 = vld [vmem:[#allocation5 + $0xa0] ss:$8 sps:$4 sm:$0xff]  }
  0xa7   :  { %1397 = vmatpush1.bf16.msra.mxu1 %v2676_v13  ;;  %v2735_v13 = vld [vmem:[#allocation3 + $0x44c] ss:$16 sps:$4 sm:$0xff]  }
  0xa8   :  { %1356 = vmatpush1.bf16.msra.mxu0 %v2673_v11  ;;  %1407 = vmatprep.subr.bf16.mxu1 %v2681_v15  ;;  %v2730_v11 = vld [vmem:[#allocation3 + $0x428] ss:$16 sps:$4 sm:$0xff]   ;;  %v2813_v15 = vld [vmem:[#allocation5 + $0xc4] ss:$8 sps:$4 sm:$0xff]  }
  0xa9   :  { %1893 = vmatprep.subr.bf16.mxu0 %v2777_v30  ;;  %v2748_v30 = vld [vmem:[#allocation3 + $0x4e8] ss:$16 sps:$4 sm:$0xff]  }
  0xaa   :  { %1399 = vmatmul.mubr.bf16.vlgmr.msra.gmra.mrb[4].mxu1 %v3026_v9  ;;  %v2697_v9 = vld [vmem:[#allocation3 + $0x2c8] ss:$16 sps:$4 sm:$0xff]  }
  0xab   :  { %1358 = vmatmul.mubr.bf16.vlgmr.msra.gmra.mrb[0].mxu0 %v3042_v16  ;;  %1408 = vmatpush1.bf16.msra.mxu1 %v2679_v17  ;;  %v2733_v17 = vld [vmem:[#allocation3 + $0x448] ss:$16 sps:$4 sm:$0xff]  }
  0xac   :  { %1439 = vmatprep.mubr.bf16.mxu1 %v3016_v53  ;;  %1409 = vmatprep.subr.bf16.mxu1 %v2684_v18  ;;  %v2702_v53 = vld [vmem:[#allocation3 + $0x2ec] ss:$16 sps:$4 sm:$0xff]  }
  0xad   :  { %1894 = vmatpush1.bf16.msra.mxu0 %v2775_v29  ;;  %v2738_v18 = vld [vmem:[#allocation3 + $0x46c] ss:$16 sps:$4 sm:$0xff]   ;;  %v2820_v29 = vld [vmem:[#allocation5 + $0xf0] ss:$8 sps:$4 sm:$0xff]  }
  0xae   :  { %1895 = vmatprep.subr.bf16.mxu0 %v2780_v31  ;;  %v2753_v31 = vld [vmem:[#allocation3 + $0x50c] ss:$16 sps:$4 sm:$0xff]  }
  0xaf   :  { %1410 = vmatpush1.bf16.msra.mxu1 %v2682_v19  ;;  %v2811_v19 = vld [vmem:[#allocation5 + $0xc0] ss:$8 sps:$4 sm:$0xff]  }
  0xb0   :  { %1411 = vmatprep.subr.bf16.mxu1 %v2687_v20  ;;  %v2816_v20 = vld [vmem:[#allocation5 + $0xd4] ss:$8 sps:$4 sm:$0xff]  }
  0xb1   :  { %1896 = vmatpush1.bf16.msra.mxu0 %v2778_v33  ;;  %v2751_v33 = vld [vmem:[#allocation3 + $0x508] ss:$16 sps:$4 sm:$0xff]  }
  0xb2   :  { %1897 = vmatprep.subr.bf16.mxu0 %v2783_v35  ;;  %v2754_v35 = vld [vmem:[#allocation3 + $0x528] ss:$16 sps:$4 sm:$0xff]  }
  0xb3   :  { %1412 = vmatpush1.bf16.msra.mxu1 %v2685_v21  ;;  %v2741_v21 = vld [vmem:[#allocation3 + $0x48c] ss:$16 sps:$4 sm:$0xff]  }
  0xb4   :  { %1413 = vmatprep.subr.bf16.mxu1 %v2690_v22  ;;  %v2739_v22 = vld [vmem:[#allocation3 + $0x488] ss:$16 sps:$4 sm:$0xff]  }
  0xb5   :  { %1898 = vmatpush1.bf16.msra.mxu0 %v2781_v38  ;;  %v2757_v38 = vld [vmem:[#allocation3 + $0x548] ss:$16 sps:$4 sm:$0xff]  }
  0xb6   :  { %1899 = vmatprep.subr.bf16.mxu0 %v2786_v40  ;;  %v2760_v40 = vld [vmem:[#allocation3 + $0x568] ss:$16 sps:$4 sm:$0xff]  }
  0xb7   :  { %1414 = vmatpush1.bf16.msra.mxu1 %v2688_v23  ;;  %v2744_v23 = vld [vmem:[#allocation3 + $0x4ac] ss:$16 sps:$4 sm:$0xff]  }
  0xb8   :  { %1415 = vmatprep.subr.bf16.mxu1 %v2693_v24  ;;  %v2742_v24 = vld [vmem:[#allocation3 + $0x4a8] ss:$16 sps:$4 sm:$0xff]  }
  0xb9   :  { %1900 = vmatpush1.bf16.msra.mxu0 %v2784_v42  ;;  %v2763_v42 = vld [vmem:[#allocation3 + $0x588] ss:$16 sps:$4 sm:$0xff]  }
  0xba   :  { %1901 = vmatprep.subr.bf16.mxu0 %v2789_v44  ;;  %v2766_v44 = vld [vmem:[#allocation3 + $0x5a8] ss:$16 sps:$4 sm:$0xff]  }
  0xbb   :  { %1416 = vmatpush1.bf16.msra.mxu1 %v2691_v25  ;;  %v2747_v25 = vld [vmem:[#allocation3 + $0x4cc] ss:$16 sps:$4 sm:$0xff]  }
  0xbc   :  { %1417 = vmatprep.subr.bf16.mxu1 %v2696_v26  ;;  %v2819_v26 = vld [vmem:[#allocation5 + $0xe4] ss:$8 sps:$4 sm:$0xff]  }
  0xbd   :  { %1902 = vmatpush1.bf16.msra.mxu0 %v2787_v46  ;;  %v2769_v46 = vld [vmem:[#allocation3 + $0x5c8] ss:$16 sps:$4 sm:$0xff]  }
  0xbe   :  { %1903 = vmatprep.subr.bf16.mxu0 %v2792_v48  ;;  %v2772_v48 = vld [vmem:[#allocation3 + $0x5e8] ss:$16 sps:$4 sm:$0xff]  }
  0xbf   :  { %1418 = vmatpush1.bf16.msra.mxu1 %v2694_v27  ;;  %v2817_v27 = vld [vmem:[#allocation5 + $0xe0] ss:$8 sps:$4 sm:$0xff]  }
  0xc0   :  { %1419 = vmatprep.subr.bf16.mxu1 %v2699_v28  ;;  %v2745_v28 = vld [vmem:[#allocation3 + $0x4c8] ss:$16 sps:$4 sm:$0xff]  }
  0xc1   :  { %1904 = vmatpush1.bf16.msra.mxu0 %v2790_v50 }
  0xc2   :  { %1905 = vmatprep.subr.bf16.mxu0 %v2795_v52 }
  0xc3   :  { %1420 = vmatpush1.bf16.msra.mxu1 %v2697_v9  ;;  %v2750_v9 = vld [vmem:[#allocation3 + $0x4ec] ss:$16 sps:$4 sm:$0xff]  }
  0xc4   :  { %1421 = vmatprep.subr.bf16.mxu1 %v2702_v53  ;;  %v2822_v53 = vld [vmem:[#allocation5 + $0xf4] ss:$8 sps:$4 sm:$0xff]  }
  0xc5   :  { %1906 = vmatpush1.bf16.msra.mxu0 %v2793_v55 }
  0xc6   :  { %1907 = vmatprep.subr.bf16.mxu0 %v2798_v57  ;;  %v3056_v57 = vld [vmem:[%s3129_s2] sm:$0xf] }
  0xc7   :  { %1422 = vmatpush1.bf16.msra.mxu1 %v2700_v32  ;;  %v2825_v32 = vld [vmem:[#allocation5 + $0x104] ss:$8 sps:$4 sm:$0xff]  }
  0xc8   :  { %1423 = vmatprep.subr.bf16.mxu1 %v2705_v34  ;;  %v2756_v34 = vld [vmem:[#allocation3 + $0x52c] ss:$16 sps:$4 sm:$0xff]  }
  0xc9   :  { %1908 = vmatpush1.bf16.msra.mxu0 %v2796_v59 }
  0xca   :  { %1909 = vmatprep.subr.bf16.mxu0 %v2801_v61 }
  0xcb   :  { %1424 = vmatpush1.bf16.msra.mxu1 %v2703_v37  ;;  %v2759_v37 = vld [vmem:[#allocation3 + $0x54c] ss:$16 sps:$4 sm:$0xff]  }
  0xcc   :  { %1425 = vmatprep.subr.bf16.mxu1 %v2708_v39  ;;  %v2762_v39 = vld [vmem:[#allocation3 + $0x56c] ss:$16 sps:$4 sm:$0xff]  }
  0xcd   :  { %1910 = vmatpush1.bf16.msra.mxu0 %v2799_v63 }
  0xce   :  { %1911 = vmatprep.subr.bf16.mxu0 %v2804_v1 }
  0xcf   :  { %1426 = vmatpush1.bf16.msra.mxu1 %v2706_v41  ;;  %v2765_v41 = vld [vmem:[#allocation3 + $0x58c] ss:$16 sps:$4 sm:$0xff]  }
  0xd0   :  { %1427 = vmatprep.subr.bf16.mxu1 %v2711_v43  ;;  %v2768_v43 = vld [vmem:[#allocation3 + $0x5ac] ss:$16 sps:$4 sm:$0xff]  }
  0xd1   :  { %1912 = vmatpush1.bf16.msra.mxu0 %v2802_v3 }
  0xd2   :  { %1913 = vmatprep.subr.bf16.mxu0 %v2807_v5 }
  0xd3   :  { %1428 = vmatpush1.bf16.msra.mxu1 %v2709_v45  ;;  %v2771_v45 = vld [vmem:[#allocation3 + $0x5cc] ss:$16 sps:$4 sm:$0xff]  }
  0xd4   :  { %1429 = vmatprep.subr.bf16.mxu1 %v2714_v47  ;;  %v2774_v47 = vld [vmem:[#allocation3 + $0x5ec] ss:$16 sps:$4 sm:$0xff]  }
  0xd5   :  { %1914 = vmatpush1.bf16.msra.mxu0 %v2805_v8 }
  0xd6   :  { %1915 = vmatprep.subr.bf16.mxu0 %v2810_v10  ;;  %v2828_v10 = vld [vmem:[#allocation5 + $0x114] ss:$8 sps:$4 sm:$0xff]  }
  0xd7   :  { %1430 = vmatpush1.bf16.msra.mxu1 %v2712_v49 }
  0xd8   :  { %1431 = vmatprep.subr.bf16.mxu1 %v2717_v51 }
  0xd9   :  { %1916 = vmatpush1.bf16.msra.mxu0 %v2808_v14  ;;  %v2873_v14 = vld [vmem:[%s3132_s5 + $0x48] sm:$0xff]  }
  0xda   :  { %1917 = vmatprep.subr.bf16.mxu0 %v2813_v15  ;;  %v2826_v15 = vld [vmem:[#allocation5 + $0x110] ss:$8 sps:$4 sm:$0xff]  }
  0xdb   :  { %1432 = vmatpush1.bf16.msra.mxu1 %v2715_v54  ;;  %v263_v54 = vlaneseq }
  0xdc   :  { %1433 = vmatprep.subr.bf16.mxu1 %v2720_v56 }
  0xdd   :  { %1918 = vmatpush1.bf16.msra.mxu0 %v2811_v19  ;;  %v3050_v55 = vshrl.u32 %v263_v54, 7  ;;  %v2875_v19 = vld [vmem:[%s3132_s5 + $0x50] sm:$0xff]  }
  0xde   :  { %1919 = vmatprep.subr.bf16.mxu0 %v2816_v20  ;;  %v2829_v20 = vld [vmem:[#allocation5 + $0x120] ss:$8 sps:$4 sm:$0xff]  }
  0xdf   :  { %1434 = vmatpush1.bf16.msra.mxu1 %v2718_v58  ;;  %v265_v56 = vsub.s32 0, %v3050_v55  ;;  %v269_v58 = vsub.s32 1, %v3050_v55 }
  0xe0   :  { %1435 = vmatprep.subr.bf16.mxu1 %v2723_v60 }
  0xe1   :  { %v270_v59 = vrot.slane %v3056_v57, %v269_v58 }
  0xe3   :  { %1436 = vmatpush1.bf16.msra.mxu1 %v2721_v62 }
  0xe4   :  { %1437 = vmatprep.subr.bf16.mxu1 %v2726_v0 }
  0xe7   :  { %1438 = vmatpush1.bf16.msra.mxu1 %v2724_v2 }
  0xe8   :  { %1448 = vmatprep.subr.bf16.mxu1 %v2729_v4 }
  0xea   :  { %1440 = vmatmul.mubr.bf16.vlgmr.msra.gmra.mrb[4].mxu1 %v3028_v12  ;;  %v2736_v12 = vld [vmem:[#allocation3 + $0x468] ss:$16 sps:$4 sm:$0xff]  }
  0xeb   :  { %1449 = vmatpush1.bf16.msra.mxu1 %v2727_v6  ;;  %1480 = vmatprep.mubr.bf16.mxu1 %v3036_v36  ;;  %v2814_v36 = vld [vmem:[#allocation5 + $0xd0] ss:$8 sps:$4 sm:$0xff]  }
  0xec   :  { %1450 = vmatprep.subr.bf16.mxu1 %v2732_v7  ;;  %1920 = vmatpush1.bf16.msra.mxu0 %v2814_v36  ;;  %v2823_v7 = vld [vmem:[#allocation5 + $0x100] ss:$8 sps:$4 sm:$0xff]   ;;  %v2877_v36 = vld [vmem:[%s3132_s5 + $0x58] sm:$0xff]  }
  0xed   :  { %1921 = vmatprep.subr.bf16.mxu0 %v2819_v26  ;;  %v2835_v26 = vld [vmem:[#allocation5 + $0x140] ss:$8 sps:$4 sm:$0xff]  }
  0xef   :  { %1451 = vmatpush1.bf16.msra.mxu1 %v2730_v11  ;;  %v2871_v11 = vld [vmem:[%s3132_s5 + $0x40] sm:$0xff]  }
  0xf0   :  { %1452 = vmatprep.subr.bf16.mxu1 %v2735_v13  ;;  %1922 = vmatpush1.bf16.msra.mxu0 %v2817_v27  ;;  %v2872_v13 = vld [vmem:[%s3132_s5] sm:$0xff]  }
  0xf1   :  { %1923 = vmatprep.subr.bf16.mxu0 %v2822_v53  ;;  %v2840_v27 = vld [vmem:[#allocation5 + $0x154] ss:$8 sps:$4 sm:$0xff]   ;;  %v2838_v53 = vld [vmem:[#allocation5 + $0x150] ss:$8 sps:$4 sm:$0xff]  }
  0xf3   :  { %1453 = vmatpush1.bf16.msra.mxu1 %v2733_v17  ;;  %v2831_v17 = vld [vmem:[#allocation5 + $0x124] ss:$8 sps:$4 sm:$0xff]  }
  0xf4   :  { %1454 = vmatprep.subr.bf16.mxu1 %v2738_v18  ;;  %1924 = vmatpush1.bf16.msra.mxu0 %v2820_v29  ;;  %v2874_v18 = vld [vmem:[%s3132_s5 + $0x8] sm:$0xff]  }
  0xf5   :  { %1934 = vmatprep.subr.bf16.mxu0 %v2825_v32  ;;  %v2843_v29 = vld [vmem:[#allocation5 + $0x164] ss:$8 sps:$4 sm:$0xff]   ;;  %v2846_v32 = vld [vmem:[#allocation5 + $0x174] ss:$8 sps:$4 sm:$0xff]  }
  0xf7   :  { %1455 = vmatpush1.bf16.msra.mxu1 %v2736_v12  ;;  %v2834_v12 = vld [vmem:[#allocation5 + $0x134] ss:$8 sps:$4 sm:$0xff]  }
  0xf8   :  { %1456 = vmatprep.subr.bf16.mxu1 %v2741_v21  ;;  %v2876_v21 = vld [vmem:[%s3132_s5 + $0x10] sm:$0xff]  }
  0xfb   :  { %1457 = vmatpush1.bf16.msra.mxu1 %v2739_v22  ;;  %v2832_v22 = vld [vmem:[#allocation5 + $0x130] ss:$8 sps:$4 sm:$0xff]  }
  0xfc   :  { %1458 = vmatprep.subr.bf16.mxu1 %v2744_v23  ;;  %v2837_v23 = vld [vmem:[#allocation5 + $0x144] ss:$8 sps:$4 sm:$0xff]  }
  0xff   :  { %1459 = vmatpush1.bf16.msra.mxu1 %v2742_v24  ;;  %v2878_v24 = vld [vmem:[%s3132_s5 + $0x18] sm:$0xff]  }
 0x100   :  { %1460 = vmatprep.subr.bf16.mxu1 %v2747_v25  ;;  %v2879_v25 = vld [vmem:[%s3132_s5 + $0x60] sm:$0xff]  }
 0x103   :  { %1461 = vmatpush1.bf16.msra.mxu1 %v2745_v28  ;;  %v2880_v28 = vld [vmem:[%s3132_s5 + $0x20] sm:$0xff]  }
 0x104   :  { %1462 = vmatprep.subr.bf16.mxu1 %v2750_v9  ;;  %v2881_v9 = vld [vmem:[%s3132_s5 + $0x68] sm:$0xff]  }
 0x107   :  { %1463 = vmatpush1.bf16.msra.mxu1 %v2748_v30  ;;  %v2882_v30 = vld [vmem:[%s3132_s5 + $0x28] sm:$0xff]  }
 0x108   :  { %1464 = vmatprep.subr.bf16.mxu1 %v2753_v31  ;;  %v2841_v31 = vld [vmem:[#allocation5 + $0x160] ss:$8 sps:$4 sm:$0xff]  }
 0x10b   :  { %1465 = vmatpush1.bf16.msra.mxu1 %v2751_v33  ;;  %v2844_v33 = vld [vmem:[#allocation5 + $0x170] ss:$8 sps:$4 sm:$0xff]  }
 0x10c   :  { %1466 = vmatprep.subr.bf16.mxu1 %v2756_v34  ;;  %v2849_v34 = vld [vmem:[#allocation5 + $0x184] ss:$8 sps:$4 sm:$0xff]  }
 0x10f   :  { %1467 = vmatpush1.bf16.msra.mxu1 %v2754_v35  ;;  %v2847_v35 = vld [vmem:[#allocation5 + $0x180] ss:$8 sps:$4 sm:$0xff]  }
 0x110   :  { %1468 = vmatprep.subr.bf16.mxu1 %v2759_v37  ;;  %v2852_v37 = vld [vmem:[#allocation5 + $0x194] ss:$8 sps:$4 sm:$0xff]  }
 0x113   :  { %1469 = vmatpush1.bf16.msra.mxu1 %v2757_v38  ;;  %v2850_v38 = vld [vmem:[#allocation5 + $0x190] ss:$8 sps:$4 sm:$0xff]  }
 0x114   :  { %1470 = vmatprep.subr.bf16.mxu1 %v2762_v39  ;;  %v2855_v39 = vld [vmem:[#allocation5 + $0x1a4] ss:$8 sps:$4 sm:$0xff]  }
 0x117   :  { %1471 = vmatpush1.bf16.msra.mxu1 %v2760_v40  ;;  %v2853_v40 = vld [vmem:[#allocation5 + $0x1a0] ss:$8 sps:$4 sm:$0xff]  }
 0x118   :  { %1472 = vmatprep.subr.bf16.mxu1 %v2765_v41  ;;  %v2858_v41 = vld [vmem:[#allocation5 + $0x1b4] ss:$8 sps:$4 sm:$0xff]  }
 0x11b   :  { %1473 = vmatpush1.bf16.msra.mxu1 %v2763_v42  ;;  %v2856_v42 = vld [vmem:[#allocation5 + $0x1b0] ss:$8 sps:$4 sm:$0xff]  }
 0x11c   :  { %1474 = vmatprep.subr.bf16.mxu1 %v2768_v43  ;;  %v2861_v43 = vld [vmem:[#allocation5 + $0x1c4] ss:$8 sps:$4 sm:$0xff]  }
 0x11f   :  { %1475 = vmatpush1.bf16.msra.mxu1 %v2766_v44  ;;  %v2859_v44 = vld [vmem:[#allocation5 + $0x1c0] ss:$8 sps:$4 sm:$0xff]  }
 0x120   :  { %1476 = vmatprep.subr.bf16.mxu1 %v2771_v45  ;;  %v2864_v45 = vld [vmem:[#allocation5 + $0x1d4] ss:$8 sps:$4 sm:$0xff]  }
 0x123   :  { %1477 = vmatpush1.bf16.msra.mxu1 %v2769_v46  ;;  %v2862_v46 = vld [vmem:[#allocation5 + $0x1d0] ss:$8 sps:$4 sm:$0xff]  }
 0x124   :  { %1478 = vmatprep.subr.bf16.mxu1 %v2774_v47  ;;  %v2867_v47 = vld [vmem:[#allocation5 + $0x1e4] ss:$8 sps:$4 sm:$0xff]  }
 0x127   :  { %1479 = vmatpush1.bf16.msra.mxu1 %v2772_v48  ;;  %v2865_v48 = vld [vmem:[#allocation5 + $0x1e0] ss:$8 sps:$4 sm:$0xff]  }
 0x128   :  { %2435 = vmatprep.subr.bf16.mxu1 %v2871_v11 }
 0x12a   :  { %1481 = vmatmul.mubr.bf16.vlgmr.msra.gmra.mrb[4].mxu1 %v3042_v16  ;;  %v266_v16 = vrot.slane %v3056_v57, %v265_v56 }
 0x12b   :  { %2436 = vmatpush3.bf16.msra.mxu1 %v2872_v13 }
 0x12c   :  { %2437 = vmatprep.subr.bf16.mxu1 %v2873_v14 }
 0x12f   :  { %2438 = vmatpush3.bf16.msra.mxu1 %v2874_v18 }
 0x130   :  { %2439 = vmatprep.subr.bf16.mxu1 %v2875_v19 }
 0x133   :  { %2440 = vmatpush3.bf16.msra.mxu1 %v2876_v21 }
 0x134   :  { %2441 = vmatprep.subr.bf16.mxu1 %v2877_v36 }
 0x137   :  { %2442 = vmatpush3.bf16.msra.mxu1 %v2878_v24 }
 0x138   :  { %2443 = vmatprep.subr.bf16.mxu1 %v2879_v25 }
 0x13b   :  { %2444 = vmatpush3.bf16.msra.mxu1 %v2880_v28 }
 0x13c   :  { %2445 = vmatprep.subr.bf16.mxu1 %v2881_v9 }
 0x13d   :  { %v1277_v49 = vpop.f32.mrb[0].mxu1 }
 0x13e   :  { %v1279_v50 = vpop.f32.mrb[1].mxu1  ;;  %v1278_v60 = vadd.f32 %v1277_v49, %v266_v16  ;;  %v2870_v49 = vld [vmem:[#allocation5 + $0x1f4] ss:$8 sps:$4 sm:$0xff]  }
 0x13f   :  { %v1281_v51 = vpop.f32.mrb[2].mxu1  ;;  %v1280_v61 = vadd.f32 %v1279_v50, %v270_v59  ;;  %2446 = vmatpush3.bf16.msra.mxu1 %v2882_v30  ;;  %v2868_v50 = vld [vmem:[#allocation5 + $0x1f0] ss:$8 sps:$4 sm:$0xff]  }
 0x140   :  { %v1282_v52 = vpop.f32.mrb[3].mxu1  ;;  %v273_v51 = vsub.s32 2, %v3050_v55 }
 0x141   :  { %v277_v52 = vsub.s32 3, %v3050_v55 }
 0x142   :  { %v274_v54 = vrot.slane %v3056_v57, %v273_v51 }
 0x143   :  { %v278_v16 = vrot.slane %v3056_v57, %v277_v52  ;;  %v2884_v57 = vld [vmem:[%s3132_s5 + $0x30] sm:$0xff]  }
 0x17e   :  { %v1359_v62 = vpop.f32.mrb[0].mxu0 }
 0x17f   :  { %v2458_v63 = vadd.f32 %v1359_v62, %v1278_v60  ;;  %v1361_v0 = vpop.f32.mrb[1].mxu0 }
 0x180   :  { %v2460_v1 = vadd.f32 %v1361_v0, %v1280_v61  ;;  %v1363_v2 = vpop.f32.mrb[2].mxu0 }
 0x181   :  { %v1489_v3 = vmax.f32 %v2458_v63, 0.0  ;;  %v1364_v4 = vpop.f32.mrb[3].mxu0 }
 0x182   :  { %v1490_v5 = vmax.f32 %v2460_v1, 0.0 }
 0x183   :  { %v1493_v8 = vpack.c.bf16 %v1489_v3, %v1489_v3 }
 0x184   :  { %v1494_v6 = vpack.c.bf16 %v1490_v5, %v1490_v5  ;;  %v2883_v5 = vld [vmem:[%s3132_s5 + $0x70] sm:$0xff]  }
 0x185   :  { %2447 = vmatprep.subr.bf16.mxu1 %v2883_v5 }
 0x186   :  { %1925 = vmatprep.mubr.bf16.mxu0 %v1494_v6  ;;  %2448 = vmatpush3.bf16.msra.mxu1 %v2884_v57  ;;  %v2885_v6 = vld [vmem:[%s3132_s5 + $0x78] sm:$0xff]  }
 0x187   :  { %1926 = vmatmul.mubr.bf16.vlgmr.msra.gmra.mrb[4].mxu0 %v1493_v8  ;;  %2449 = vmatprep.subr.bf16.mxu1 %v2885_v6  ;;  %v1561_v8 = vld [vmem:[%s3131_s4] sm:$0x3] }
 0x188   :  { %1935 = vmatpush1.bf16.msra.mxu0 %v2823_v7  ;;  %v2886_v7 = vld [vmem:[%s3132_s5 + $0x38] sm:$0xff]   ;;  %v1570_v11 = vrot.slane %v1561_v8, %v269_v58 }
 0x189   :  { %1936 = vmatprep.subr.bf16.mxu0 %v2828_v10  ;;  %v1566_v10 = vrot.slane %v1561_v8, %v265_v56 }
 0x18a   :  { %2450 = vmatpush3.bf16.msra.mxu1 %v2886_v7 }
 0x18c   :  { %1937 = vmatpush1.bf16.msra.mxu0 %v2826_v15 }
 0x18d   :  { %1938 = vmatprep.subr.bf16.mxu0 %v2831_v17 }
 0x190   :  { %1939 = vmatpush1.bf16.msra.mxu0 %v2829_v20 }
 0x191   :  { %1940 = vmatprep.subr.bf16.mxu0 %v2834_v12 }
 0x194   :  { %1941 = vmatpush1.bf16.msra.mxu0 %v2832_v22 }
 0x195   :  { %1942 = vmatprep.subr.bf16.mxu0 %v2837_v23  ;;  %v2418_v23 = vld [vmem:[#allocation2] ss:$0 sm:$0xff] }
 0x198   :  { %1943 = vmatpush1.bf16.msra.mxu0 %v2835_v26 }
 0x199   :  { %1944 = vmatprep.subr.bf16.mxu0 %v2840_v27 }
 0x19c   :  { %1945 = vmatpush1.bf16.msra.mxu0 %v2838_v53 }
 0x19d   :  { %1946 = vmatprep.subr.bf16.mxu0 %v2843_v29 }
 0x1a0   :  { %1947 = vmatpush1.bf16.msra.mxu0 %v2841_v31 }
 0x1a1   :  { %1948 = vmatprep.subr.bf16.mxu0 %v2846_v32 }
 0x1a4   :  { %1949 = vmatpush1.bf16.msra.mxu0 %v2844_v33 }
 0x1a5   :  { %1950 = vmatprep.subr.bf16.mxu0 %v2849_v34 }
 0x1a8   :  { %1951 = vmatpush1.bf16.msra.mxu0 %v2847_v35 }
 0x1a9   :  { %1952 = vmatprep.subr.bf16.mxu0 %v2852_v37 }
 0x1ac   :  { %1953 = vmatpush1.bf16.msra.mxu0 %v2850_v38 }
 0x1ad   :  { %1954 = vmatprep.subr.bf16.mxu0 %v2855_v39 }
 0x1b0   :  { %1955 = vmatpush1.bf16.msra.mxu0 %v2853_v40 }
 0x1b1   :  { %1956 = vmatprep.subr.bf16.mxu0 %v2858_v41 }
 0x1b4   :  { %1957 = vmatpush1.bf16.msra.mxu0 %v2856_v42 }
 0x1b5   :  { %1958 = vmatprep.subr.bf16.mxu0 %v2861_v43 }
 0x1b8   :  { %1959 = vmatpush1.bf16.msra.mxu0 %v2859_v44 }
 0x1b9   :  { %1960 = vmatprep.subr.bf16.mxu0 %v2864_v45 }
 0x1bc   :  { %1961 = vmatpush1.bf16.msra.mxu0 %v2862_v46 }
 0x1bd   :  { %1962 = vmatprep.subr.bf16.mxu0 %v2867_v47 }
 0x1c0   :  { %1963 = vmatpush1.bf16.msra.mxu0 %v2865_v48 }
 0x1c1   :  { %1964 = vmatprep.subr.bf16.mxu0 %v2870_v49 }
 0x1c4   :  { %1965 = vmatpush1.bf16.msra.mxu0 %v2868_v50 }
 0x1fd   :  { %v1482_v59 = vpop.f32.mrb[4].mxu1 }
 0x1fe   :  { %v2461_v60 = vadd.f32 %v1482_v59, %v274_v54  ;;  %v1484_v61 = vpop.f32.mrb[5].mxu1 }
 0x1ff   :  { %v2462_v62 = vadd.f32 %v1484_v61, %v278_v16  ;;  %v1486_v63 = vpop.f32.mrb[6].mxu1 }
 0x200   :  { %v1491_v0 = vmax.f32 %v2461_v60, 0.0  ;;  %v1487_v1 = vpop.f32.mrb[7].mxu1 }
 0x201   :  { %v1492_v2 = vmax.f32 %v2462_v62, 0.0 }
 0x202   :  { %v1495_v4 = vpack.c.bf16 %v1491_v0, %v1491_v0 }
 0x203   :  { %v1496_v3 = vpack.c.bf16 %v1492_v2, %v1492_v2 }
 0x205   :  { %1966 = vmatprep.mubr.bf16.mxu0 %v1496_v3 }
 0x206   :  { %1967 = vmatmul.mubr.bf16.vlgmr.msra.gmra.mrb[4].mxu0 %v1495_v4 }
 0x2d9   :  { %v1968_v13 = vpop.f32.mrb[4].mxu0 }
 0x2da   :  { %v2463_v14 = vadd.f32 %v1968_v13, %v1566_v10  ;;  %v1970_v15 = vpop.f32.mrb[5].mxu0 }
 0x2db   :  { %v2464_v17 = vadd.f32 %v1970_v15, %v1570_v11  ;;  %v1972_v18 = vpop.f32.mrb[6].mxu0 }
 0x2dc   :  { %v1975_v19 = vmax.f32 %v2463_v14, 0.0  ;;  %v1973_v20 = vpop.f32.mrb[7].mxu0 }
 0x2dd   :  { %v1976_v12 = vmax.f32 %v2464_v17, 0.0 }
 0x2de   :  { %v1977_v36 = vpack.c.bf16 %v1975_v19, %v1975_v19 }
 0x2df   :  { %v1978_v21 = vpack.c.bf16 %v1976_v12, %v1976_v12 }
 0x2e1   :  { %2146 = vmatprep.mubr.bf16.mxu1 %v1978_v21 }
 0x2e2   :  { %2147 = vmatmul.mubr.bf16.vlgmr.msra.gmra.mrb[8].mxu1 %v1977_v36 }
 0x3b5   :  { %v2451_v22 = vpop.f32.mrb[8].mxu1 }
 0x3b6   :  { %v2452_v24 = vpop.f32.mrb[9].mxu1 }
 0x3b7   :  { %v2453_v25 = vadd.f32 %v2452_v24, %v2451_v22  ;;  %v2454_v56 = vpop.f32.mrb[10].mxu1 }
 0x3b8   :  { %v2455_v55 = vpop.f32.mrb[11].mxu1 }
 0x3b9   :  { %v2149_v58 = vadd.f32 %v2453_v25, %v2418_v23 }
 0x3bb   :  { %2155 = vst.msk [vmem:[%s3134_s7] sm:$0xff] %vm2154_vm0, %v2149_v58 }
 0x3bc   :  { %2160 = vsyncpa [#allocation4], 1 }
 0x3bd   :  { %2161 = vsyncpa [#allocation6], 1 }

</bundles_post_ra>
